<compile_context>
chip_gen: v5e
topology: v5e:2x2
jax: 0.10.0
libtpu: 0.0.40
codegen_flags: <defaults>
</compile_context>

<pallas_src>
import functools

import jax
import jax.numpy as jnp
from jax.experimental import pallas as pl
from jax.experimental.pallas import tpu as pltpu


def _round_up(x, m):
    return ((x + m - 1) // m) * m


def _linear_kernel(x_ref, w_ref, b_ref, o_ref):
    # x_ref: (TB, D) bf16, w_ref: (D, TN) bf16, b_ref: (1, TN) f32 -> o_ref: (TB, TN) f32
    o_ref[...] = (
        jnp.dot(x_ref[...], w_ref[...], preferred_element_type=jnp.float32)
        + b_ref[...]
    )


_TB_CANDIDATES = (128, 64, 32, 16, 8)


def _choose_tb(B):
    """Batch tile: minimize padding; for B >= 16 require >= 2 batch programs
    (v7x has 2 TensorCores); ties go to the larger tile (fewer grid steps)."""
    cands = list(_TB_CANDIDATES)
    if B >= 16:
        two = [t for t in cands if _round_up(B, t) // t >= 2]
        if two:
            cands = two
    best = None
    for t in cands:
        pad = _round_up(B, t) - B
        if best is None or pad < best[1] or (pad == best[1] and t > best[0]):
            best = (t, pad)
    return best[0]


def _padded_g1(G1):
    """Production axis padded to a multiple of 128 (lane-dense stores)."""
    return _round_up(G1, 128)


def _choose_tn(G1p):
    """Full-width N tile when it fits (<= 512); otherwise the largest multiple
    of 128 that divides G1p (128 always divides G1p)."""
    if G1p <= 512:
        return G1p
    for t in (512, 384, 256, 128):
        if G1p % t == 0:
            return t
    return 128  # unreachable


def _padded_log_productions(x, w_p, b_p, *, g1):
    """logProductions = X @ w_p + b_p, computed by a Pallas TPU kernel.

    x:   (D,) or (B, D)   any float dtype (cast to bf16 for the MXU)
    w_p: (D, G1p) bf16    pre-padded transposed Linear weight (built in __init__)
    b_p: (1, G1p) f32     pre-padded bias
    returns (G1,) or (B, G1) float32
    """
    assert w_p.dtype == jnp.bfloat16, "weights must be pre-cast to bf16"
    squeeze = x.ndim == 1
    X = x.reshape(1, -1) if squeeze else x
    B, D = X.shape
    G1p = w_p.shape[1]

    TB = _choose_tb(B)
    Bp = _round_up(B, TB)
    TN = _choose_tn(G1p)
    nB, nN = Bp // TB, G1p // TN

    # Pad/cast X (cheap, fused under jit; padded rows only pick up the bias,
    # which the out[:B, :g1] slice below removes).
    Xp = jnp.zeros((Bp, D), jnp.bfloat16).at[:B].set(X.astype(jnp.bfloat16))

    # VMEM budget: double-buffered X/W/bias tiles + double-buffered f32 output.
    vmem_bytes = 2 * (TB * D * 2 + D * TN * 2 + TN * 4 + TB * TN * 4)
    cp_kwargs = {}
    if vmem_bytes > 12 * 1024 * 1024:  # v5e default scoped VMEM is 16 MiB
        cp_kwargs["vmem_limit_bytes"] = min(int(vmem_bytes * 2), 100 * 1024 * 1024)

    if nN == 1:
        # Single full-width N tile: W/bias DMA'd once, grid only over batch.
        grid = (nB,)
        in_specs = [
            pl.BlockSpec((TB, D), lambda i: (i, 0)),
            pl.BlockSpec((D, TN), lambda i: (0, 0)),
            pl.BlockSpec((1, TN), lambda i: (0, 0)),
        ]
        out_specs = pl.BlockSpec((TB, TN), lambda i: (i, 0))
        dims = ("parallel",)
    else:
        # N outermost so the large (D, TN) W tile stays resident across the
        # inner batch loop (no redundant W re-streaming per batch tile).
        grid = (nN, nB)
        in_specs = [
            pl.BlockSpec((TB, D), lambda j, i: (i, 0)),
            pl.BlockSpec((D, TN), lambda j, i: (0, j)),
            pl.BlockSpec((1, TN), lambda j, i: (0, j)),
        ]
        out_specs = pl.BlockSpec((TB, TN), lambda j, i: (i, j))
        dims = ("parallel", "parallel")

    bytes_accessed = Xp.size * 2 + w_p.size * 2 + b_p.size * 4 + Bp * G1p * 4
    out = pl.pallas_call(
        _linear_kernel,
        out_shape=jax.ShapeDtypeStruct((Bp, G1p), jnp.float32),
        grid=grid,
        in_specs=in_specs,
        out_specs=out_specs,
        compiler_params=pltpu.CompilerParams(
            dimension_semantics=dims, **cp_kwargs
        ),
        cost_estimate=pl.CostEstimate(
            flops=2 * Bp * D * G1p,
            transcendentals=0,
            bytes_accessed=bytes_accessed,
        ),
    )(Xp, w_p, b_p)

    out = out[:B, :g1]  # strip padded rows / padded production columns
    return out[0] if squeeze else out


class GrammarNetworkPallas:
    """Mirrors dreamcoder.recognition.GrammarNetwork.

    `productions` is a synthetic list of (type, program) placeholders standing
    in for grammar.productions; the network has len(grammar)+1 outputs (the
    extra slot is the variable / Index(0) log-probability).
    """

    def __init__(self, input_dim, productions, key):
        self.productions = productions
        self.input_dim = input_dim
        G1 = len(productions) + 1
        self.G1 = G1

        kw, kb = jax.random.split(key)
        bound = 1.0 / (input_dim ** 0.5)
        # PyTorch nn.Linear-style init: U(-1/sqrt(D), 1/sqrt(D)); keep an f32
        # master copy and a pre-transposed (D, G+1) layout.
        self.w_t = jax.random.uniform(
            kw, (input_dim, G1), jnp.float32, -bound, bound
        )
        self.b = jax.random.uniform(kb, (G1,), jnp.float32, -bound, bound)

        # One-time padded/bf16 parameter prep (hoisted out of the per-call path).
        G1p = _padded_g1(G1)
        self.w_p = (
            jnp.zeros((input_dim, G1p), jnp.bfloat16)
            .at[:, :G1]
            .set(self.w_t.astype(jnp.bfloat16))
        )
        self.b_p = (
            jnp.zeros((1, G1p), jnp.float32).at[:, :G1].set(self.b.reshape(1, G1))
        )

        # Whole padded path (pad/cast X -> pallas_call -> slice) under one jit.
        self._lp_jit = jax.jit(functools.partial(_padded_log_productions, g1=G1))

    # ---- device-side log-production computation -------------------------
    def batched_log_productions(self, X):
        """X: (B, D) -> (B, G+1) logProductions. The intended hot path."""
        return self._lp_jit(X, self.w_p, self.b_p)

    def log_productions(self, x):
        """x: (D,) -> (G+1,) logProductions."""
        return self._lp_jit(x, self.w_p, self.b_p)

    # ---- Grammar assembly (host) ----------------------------------------
    def _assemble_grammar(self, lp_host_row, lp_dev_row):
        log_variable = lp_host_row[-1:].copy()
        prods = [
            (lp_host_row[k : k + 1].copy(), t, program)
            for k, (t, program) in enumerate(self.productions)
        ]
        # TODO(synk): Grammar is a symbolic dreamcoder object; represented here
        # as a dict with the same tensor-valued fields.
        return {
            "logVariable": log_variable,
            "productions": prods,
            "continuationType": None,
            "logProductions": lp_dev_row,  # device f32 vector for this task
        }

    def forward(self, x):
        """Single-task forward (module semantics): one kernel call, ONE D2H copy."""
        lp = self.log_productions(x)
        lp_host = jax.device_get(lp)
        return self._assemble_grammar(lp_host, lp)

    def batched_forward(self, X):
        """Run many tasks per kernel call; ONE device_get for the whole batch,
        per-task slicing on host (amortizes the D2H sync over the batch)."""
        lp = self.batched_log_productions(X)
        lp_host = jax.device_get(lp)
        return [self._assemble_grammar(lp_host[b], lp[b]) for b in range(lp_host.shape[0])]


if __name__ == "__main__":
    key = jax.random.PRNGKey(0)

    # ---- small config matching the module (hot path) --------------------
    input_dim = 32          # inputDimensionality
    n_productions = 7       # len(grammar) -> Linear output dim = 8
    batch = 4               # tasks batched per kernel call

    productions = [(f"t{k}", f"prim_{k}") for k in range(n_productions)]
    k_param, k_x, k_param2, k_x2 = jax.random.split(key, 4)

    net = GrammarNetworkPallas(input_dim, productions, k_param)
    Xb = jax.random.normal(k_x, (batch, input_dim), jnp.float32)

    lp_batch = net.batched_log_productions(Xb)
    jax.block_until_ready(lp_batch)

    # Reference: exact f32 math on the bf16-rounded operands (kernel uses bf16
    # operands with f32 accumulation), plus a loose check vs. true f32 Linear.
    Wbf32 = net.w_p[:, : net.G1].astype(jnp.float32)
    ref_bf16ops = Xb.astype(jnp.bfloat16).astype(jnp.float32) @ Wbf32 + net.b
    ref_f32 = Xb @ net.w_t + net.b
    assert jnp.allclose(lp_batch, ref_bf16ops, atol=1e-3, rtol=1e-3), \
        "batched mismatch vs bf16-operand reference"
    assert jnp.allclose(lp_batch, ref_f32, atol=5e-2, rtol=5e-2), \
        "batched drift vs true f32 Linear too large"

    # Single-task forward (module semantics).
    g0 = net.forward(Xb[0])
    jax.block_until_ready(g0["logProductions"])
    got0 = jnp.concatenate(
        [jnp.asarray(p[0]) for p in g0["productions"]]
        + [jnp.asarray(g0["logVariable"])]
    )
    assert jnp.allclose(got0, ref_bf16ops[0], atol=1e-3, rtol=1e-3), \
        "single-task forward mismatch"

    # Batched Grammar assembly: one kernel call + one device_get for all tasks.
    grams = net.batched_forward(Xb)
    gotb = jnp.stack(
        [
            jnp.concatenate(
                [jnp.asarray(p[0]) for p in g["productions"]]
                + [jnp.asarray(g["logVariable"])]
            )
            for g in grams
        ]
    )
    assert jnp.allclose(gotb, ref_bf16ops, atol=1e-3, rtol=1e-3), \
        "batched_forward mismatch"

    # ---- second config: exercises multi-batch-tile grid + wide N tile ----
    input_dim2, n_prod2, batch2 = 64, 300, 20   # G1=301 -> G1p=384 single N tile
    productions2 = [(f"t{k}", f"prim_{k}") for k in range(n_prod2)]
    net2 = GrammarNetworkPallas(input_dim2, productions2, k_param2)
    Xb2 = jax.random.normal(k_x2, (batch2, input_dim2), jnp.float32)
    lp2 = net2.batched_log_productions(Xb2)
    jax.block_until_ready(lp2)
    W2bf32 = net2.w_p[:, : net2.G1].astype(jnp.float32)
    ref2 = Xb2.astype(jnp.bfloat16).astype(jnp.float32) @ W2bf32 + net2.b
    assert jnp.allclose(lp2, ref2, atol=1e-3, rtol=1e-3), \
        "wide-grammar batched mismatch"

    print("KERNEL_OK")
</pallas_src>

<mosaic_0001>
module attributes {stable_mosaic.version = 11 : i64} {
  func.func @_linear_kernel(%arg0: i32, %arg1: memref<8x32xbf16, #tpu.memory_space<vmem>>, %arg2: memref<32x128xbf16, #tpu.memory_space<vmem>>, %arg3: memref<1x128xf32, #tpu.memory_space<vmem>>, %arg4: memref<8x128xf32, #tpu.memory_space<vmem>>) attributes {dimension_semantics = [#tpu.dimension_semantics<parallel>], iteration_bounds = array<i64: 1>, scalar_prefetch = 0 : i64, scratch_operands = 0 : i64, tpu.core_type = #tpu.core_type<tc>, window_params = [{transform_indices = @transform_0, window_bounds = array<i64: 8, 32>}, {pipeline_mode = #tpu.pipeline_mode<synchronous>, transform_indices = @transform_1, window_bounds = array<i64: 32, 128>}, {pipeline_mode = #tpu.pipeline_mode<synchronous>, transform_indices = @transform_2, window_bounds = array<i64: 1, 128>}, {transform_indices = @transform_3, window_bounds = array<i64: 8, 128>}]} {
    %c0 = arith.constant 0 : index
    %c0_0 = arith.constant 0 : index
    %0 = vector.load %arg1[%c0, %c0_0] : memref<8x32xbf16, #tpu.memory_space<vmem>>, vector<8x32xbf16>
    %c0_1 = arith.constant 0 : index
    %c0_2 = arith.constant 0 : index
    %1 = vector.load %arg2[%c0_1, %c0_2] : memref<32x128xbf16, #tpu.memory_space<vmem>>, vector<32x128xbf16>
    %cst = arith.constant dense<0.000000e+00> : vector<8x128xf32>
    %2 = tpu.matmul %0, %1, %cst {dimension_numbers = #tpu.dot_dimension_numbers<[1], [0], [0], [1], [0, 0, 1, 1], [], []>} : vector<8x32xbf16>, vector<32x128xbf16>, vector<8x128xf32> -> vector<8x128xf32>
    %c0_3 = arith.constant 0 : index
    %c0_4 = arith.constant 0 : index
    %3 = vector.load %arg3[%c0_3, %c0_4] : memref<1x128xf32, #tpu.memory_space<vmem>>, vector<1x128xf32>
    %4 = vector.broadcast %3 : vector<1x128xf32> to vector<8x128xf32>
    %5 = arith.addf %2, %4 : vector<8x128xf32>
    %c0_5 = arith.constant 0 : index
    %c0_6 = arith.constant 0 : index
    %6 = vector.load %arg4[%c0_5, %c0_6] : memref<8x128xf32, #tpu.memory_space<vmem>>, vector<8x128xf32>
    tpu.vector_store %arg4[%c0_5, %c0_6], %5 {strides = array<i32>} : memref<8x128xf32, #tpu.memory_space<vmem>>, vector<8x128xf32>,
    return
  }
  func.func @transform_0(%arg0: i32) -> (i32, i32) {
    %c0_i32 = arith.constant 0 : i32
    %c0_i32_0 = arith.constant 0 : i32
    return %arg0, %c0_i32 : i32, i32
  }
  func.func @transform_1(%arg0: i32) -> (i32, i32) {
    %c0_i32 = arith.constant 0 : i32
    %c0_i32_0 = arith.constant 0 : i32
    %c0_i32_1 = arith.constant 0 : i32
    return %c0_i32, %c0_i32_0 : i32, i32
  }
  func.func @transform_2(%arg0: i32) -> (i32, i32) {
    %c0_i32 = arith.constant 0 : i32
    %c0_i32_0 = arith.constant 0 : i32
    %c0_i32_1 = arith.constant 0 : i32
    return %c0_i32, %c0_i32_0 : i32, i32
  }
  func.func @transform_3(%arg0: i32) -> (i32, i32) {
    %c0_i32 = arith.constant 0 : i32
    %c0_i32_0 = arith.constant 0 : i32
    return %arg0, %c0_i32 : i32, i32
  }
}

</mosaic_0001>

<bundles_post_ra>
// kernel: _padded_log_productions.1
= control target key start
LH: loop header
LB: loop body
LE: loop exit
PB: predicated region body
PF: predicated region fallthrough
CT: control target
= control target key end

     0   :  { %8 = vsyncpa [#allocation3], 0  ;;  %s116_s15 = smov [#allocation2]   ;;  %s117_s17 = smov 64   ;;  %s151_s0 = inlined_call_operand.vmem [shape: bf16[8,32], index: 0, kind: input, shape index: {}]   ;;  %s152_s1 = inlined_call_operand.hbm [shape: bf16[32,128], index: 1, kind: input, shape index: {}]   ;;  %s153_s2 = inlined_call_operand.vmem [shape: f32[1,128], index: 2, kind: input, shape index: {}]   ;;  %s154_s3 = inlined_call_operand.vmem [shape: f32[8,128], index: 3, kind: output, shape index: {}]  }
   0x1   :  { %s15_s14 = sshll.u32 %s152_s1, 4  ;;  %s17_s16 = sshll.u32 %s116_s15, 4  ;;  %s16_s14 = int_to_ptr.hbm [resolvable:$true] %s15_s14  ;;  %s18_s16 = int_to_ptr.vmem [resolvable:$true] %s17_s16 }
   0x2   :  { %s118_s18 = smov 4  }
   0x3   :  { %23 = dma.hbm_to_vmem [thread:$0]  %s16_s14, 256, %s18_s16, [#allocation3], %s117_s17, %s117_s17, %s118_s18  }
   0x4   :  { %114 = dma.done.wait [#allocation3], 256  }
   0x5   :  { %115 = vsyncadd [#allocation3], 4294967040  ;;  %v85_v0 = vld [vmem:[#allocation2 + $0x8] sm:$0xff]  ;;  %v84_v1 = vld [vmem:[#allocation2] sm:$0xff]  ;;  %vm52_vm0 = vcmask 261120  }
   0x6   :  { %62 = vmatpush.bf16.msra.mxu0 %v85_v0  ;;  %v31_v2 = vld [vmem:[%s151_s0] sm:$0xf] }
   0x7   :  { %v89_v3 = vld [vmem:[%s153_s2] ss:$0 sm:$0xff] }
   0xa   :  { %63 = vmatpush.bf16.msra.mxu0 %v84_v1 }
   0xd   :  { %83 = vmatmul.msk.bf16.vlgmr.msra.gmra.mxu0 %vm52_vm0, %v31_v2 }
  0x8a   :  { %v65_v4 = vpop.f32.mrf.mxu0 }
  0x8b   :  { %v66_v5 = vadd.f32 %v89_v3, %v65_v4 }
  0x8d   :  { %69 = vst [vmem:[%s154_s3] sm:$0xff] %v66_v5 }
  0x92   :  { %v67_v6 = vpop.f32.mrf.mxu0 }
  0x93   :  { %74 = vsyncpa [#allocation3], 1 }

</bundles_post_ra>
